<compile_context>
chip_gen: v7x
topology: tpu7x:2x2x1
jax: 0.10.0
libtpu: 0.0.40
codegen_flags: <defaults>
</compile_context>

<pallas_src>
import functools

import jax
import jax.numpy as jnp
from jax.experimental import pallas as pl
from jax.experimental.pallas import tpu as pltpu


def _round_up(x, m):
    return ((x + m - 1) // m) * m


def _conv_kernel(x_ref, w_ref, b_ref, o_ref, acc_ref, *, offsets, tm, apply_relu):
    """One (batch, row-tile, Cout-tile, Cin-tile) grid step.

    x_ref:   (1, 1, Rt, tc_in)       bf16  row tile of padded, flattened activations
    w_ref:   (n_taps, tc_in, tc_out) bf16  folded conv weight (BN scale applied)
    b_ref:   (1, tc_out)             f32   fused bias*scale + shift
    o_ref:   (1, 1, tm, tc_out)      bf16  dense (padded-pitch) output rows
    acc_ref: (tm, tc_out)            f32   accumulator, resident across the Cin axis
    """
    k = pl.program_id(3)

    @pl.when(k == 0)
    def _init():
        acc_ref[...] = jnp.zeros_like(acc_ref)

    # Implicit im2col: every tap is a contiguous shifted window of the flattened row tile.
    # Sum all taps first, then one accumulator read-modify-write per grid step.
    contrib = None
    for t, d in enumerate(offsets):
        lhs = x_ref[0, 0, pl.ds(d, tm), :]                           # (tm, tc_in) bf16
        part = jnp.dot(lhs, w_ref[t], preferred_element_type=jnp.float32)
        contrib = part if contrib is None else contrib + part
    acc_ref[...] += contrib

    @pl.when(k == pl.num_programs(3) - 1)
    def _finalize():
        out = acc_ref[...] + b_ref[...]
        if apply_relu:
            out = jnp.maximum(out, 0.0)
        o_ref[0, 0] = out.astype(o_ref.dtype)


def base_conv_forward(x, weight, bias, *, kernel, stride=1,
                      use_bn=False, bn_gamma=None, bn_beta=None,
                      bn_mean=None, bn_var=None, bn_eps=1e-5,
                      activation=None, target_rows=2048,
                      vmem_budget_bytes=44 * 1024 * 1024):
    """Forward pass of BaseConv.

    x:      (N, Cin, H, W)    float32  (NCHW, like PyTorch)
    weight: (Cout, Cin, K, K) float32  (OIHW, like PyTorch)
    bias:   (Cout,)
    Returns (N, Cout, Ho, Wo) float32 in NCHW.
    """
    N, C, H, W = map(int, x.shape)
    Cout = int(weight.shape[0])
    K = int(kernel)
    p = K // 2

    # Dense (stride-1) output geometry on the padded, 8-aligned row pitch Wp8.
    Hp, Wp = H + 2 * p, W + 2 * p
    Ho1, Wo1 = Hp - K + 1, Wp - K + 1
    Wp8 = _round_up(Wp, 8)

    # ---- BN folding (inference form, running stats) --------------------------------
    # TODO(synk): PyTorch BatchNorm2d in training mode uses per-batch statistics; here we
    #             fold the running stats (PyTorch defaults: mean=0, var=1).
    if use_bn:
        scale = bn_gamma / jnp.sqrt(bn_var + bn_eps)
        shift = bn_beta - bn_mean * scale
    else:
        scale = jnp.ones((Cout,), jnp.float32)
        shift = jnp.zeros((Cout,), jnp.float32)

    # ---- tap folding / channel tiling -----------------------------------------------
    # Small-Cin layers: fold the kw taps into the contraction dim (K*C deep); remaining
    # tap offsets are kh*Wp8, i.e. multiples of 8 -> every slice is sublane aligned.
    fold_kw = C < 128
    n_taps = K if fold_kw else K * K
    C_eff = (K if fold_kw else 1) * C

    if C_eff <= 512:
        tc_in, C_eff_pad = C_eff, C_eff
    else:
        tc_in = 256                                   # v6e/v7x: keep the 256-wide MXU full
        C_eff_pad = _round_up(C_eff, tc_in)
    n_ci = C_eff_pad // tc_in

    # Lane-dense output: pad Cout up to a multiple of 128, prefer a single Cout tile so
    # the activations are streamed from HBM only once.
    Cout_pad = _round_up(Cout, 128)
    if Cout_pad <= 1024:
        tc_out = Cout_pad
    elif Cout_pad % 512 == 0:
        tc_out = 512
    elif Cout_pad % 256 == 0:
        tc_out = 256
    else:
        tc_out = 128
    n_co = Cout_pad // tc_out

    # ---- spatial (M) tiling: TH dense output rows per tile, bounded VMEM -------------
    halo = 0 if fold_kw else (K - 1)

    def tile_geom(th):
        tm = th * Wp8
        rt = _round_up((th + K - 1) * Wp8 + halo, 8)
        return tm, rt

    def vmem_est(th):
        tm, rt = tile_geom(th)
        return (2 * rt * tc_in * 2                     # x block, double-buffered bf16
                + 2 * n_taps * tc_in * tc_out * 2      # weight block
                + 2 * tm * tc_out * 2                  # bf16 output block
                + tm * tc_out * 4                      # f32 accumulator scratch
                + 2 * tc_out * 4)                      # fused bias

    TH = max(1, min(Ho1, target_rows // Wp8))
    while TH > 1 and vmem_est(TH) > vmem_budget_bytes:
        TH = max(1, TH // 2)
    TM, Rt = tile_geom(TH)
    n_mt = -(-Ho1 // TH)

    # ---- fold BN scale into the weight; fuse bias/shift -------------------------------
    w_f = weight * scale[:, None, None, None]                      # (Cout, C, K, K)
    w_t = jnp.transpose(w_f, (2, 3, 1, 0))                         # (K, K, C, Cout)
    w_eff = w_t.reshape(n_taps, C_eff, Cout)                       # kw folded (or not)
    w_eff = jnp.pad(w_eff, ((0, 0), (0, C_eff_pad - C_eff), (0, Cout_pad - Cout)))
    w_eff = w_eff.astype(jnp.bfloat16)
    b_fused = jnp.pad(bias * scale + shift, (0, Cout_pad - Cout))
    b_fused = b_fused.reshape(1, Cout_pad).astype(jnp.float32)

    # ---- activations: NCHW -> NHWC, spatial pad, flatten, bf16, row tiles -------------
    # TODO(synk): keeping the model NHWC + bf16 end-to-end would drop this transpose/cast
    #             (and the transpose on the way out).
    Hp_tot = n_mt * TH + K - 1
    xh = jnp.transpose(x, (0, 2, 3, 1))                            # NHWC
    xp = jnp.pad(xh, ((0, 0), (p, Hp_tot - H - p), (p, Wp8 - W - p), (0, 0)))
    xf = xp.astype(jnp.bfloat16).reshape(N, Hp_tot * Wp8, C)
    Rtot = Hp_tot * Wp8

    if fold_kw:
        xf_ext = jnp.pad(xf, ((0, 0), (0, K - 1), (0, 0)))
        x_eff = jnp.concatenate([xf_ext[:, kw:kw + Rtot, :] for kw in range(K)], axis=-1)
        offsets = tuple(kh * Wp8 for kh in range(K))               # all sublane aligned
    else:
        x_eff = xf
        # TODO(synk): kw offsets are not 8-aligned on this path; one aligned load per kh
        #             plus a pltpu.roll for the kw shift would move that work to the XLU.
        offsets = tuple(kh * Wp8 + kw for kh in range(K) for kw in range(K))

    if C_eff_pad != C_eff:
        x_eff = jnp.pad(x_eff, ((0, 0), (0, 0), (0, C_eff_pad - C_eff)))

    rows_needed = (n_mt - 1) * TM + Rt
    if rows_needed > Rtot:
        x_eff = jnp.pad(x_eff, ((0, 0), (0, rows_needed - Rtot), (0, 0)))
    # Non-overlapping row tiles carrying their own (K-1)-row halo.
    x_tiles = jnp.stack([x_eff[:, m * TM:m * TM + Rt, :] for m in range(n_mt)], axis=1)

    apply_relu = activation == "relu"
    # TODO(synk): only ReLU (or no activation) is fused into the epilogue.
    kernel_fn = functools.partial(_conv_kernel, offsets=offsets, tm=TM,
                                  apply_relu=apply_relu)

    flops = 2 * N * n_mt * TM * n_taps * C_eff_pad * Cout_pad
    bytes_accessed = int(x_tiles.size * 2 * n_co + w_eff.size * 2 * N * n_mt
                         + b_fused.size * 4 + N * n_mt * TM * Cout_pad * 2)
    cost = pl.CostEstimate(flops=flops, transcendentals=0, bytes_accessed=bytes_accessed)

    vmem_limit = max(16 << 20, min(int(vmem_est(TH) * 1.35) + (2 << 20), 128 << 20))

    out_tiled = pl.pallas_call(
        kernel_fn,
        out_shape=jax.ShapeDtypeStruct((N, n_mt, TM, Cout_pad), jnp.bfloat16),
        grid_spec=pltpu.PrefetchScalarGridSpec(
            num_scalar_prefetch=0,
            grid=(N, n_mt, n_co, n_ci),
            in_specs=[
                pl.BlockSpec((1, 1, Rt, tc_in), lambda n, m, j, k: (n, m, 0, k)),
                pl.BlockSpec((n_taps, tc_in, tc_out), lambda n, m, j, k: (0, k, j)),
                pl.BlockSpec((1, tc_out), lambda n, m, j, k: (0, j)),
            ],
            out_specs=pl.BlockSpec((1, 1, TM, tc_out), lambda n, m, j, k: (n, m, 0, j)),
            scratch_shapes=[pltpu.VMEM((TM, tc_out), jnp.float32)],
        ),
        compiler_params=pltpu.CompilerParams(
            dimension_semantics=("parallel", "parallel", "parallel", "arbitrary"),
            vmem_limit_bytes=vmem_limit),
        cost_estimate=cost,
    )(x_tiles, w_eff, b_fused)

    # ---- epilogue: un-tile, drop garbage cols/rows, subsample, back to NCHW + f32 -----
    out_nhwc = out_tiled.reshape(N, n_mt * TH, Wp8, Cout_pad)
    # TODO(synk): stride>1 computes the dense (stride-1) rows then subsamples; a dedicated
    #             strided index_map would avoid the redundant MXU work.
    out_nhwc = out_nhwc[:, :Ho1:stride, :Wo1:stride, :Cout].astype(jnp.float32)
    return jnp.transpose(out_nhwc, (0, 3, 1, 2))


def _reference(x, weight, bias, *, kernel, stride, use_bn, bn_gamma, bn_beta,
               bn_mean, bn_var, bn_eps, activation):
    p = kernel // 2
    if use_bn:
        scale = bn_gamma / jnp.sqrt(bn_var + bn_eps)
        shift = bn_beta - bn_mean * scale
    else:
        scale = jnp.ones_like(bias)
        shift = jnp.zeros_like(bias)
    # Same bf16 quantization of activations / folded weight as the kernel.
    xq = x.astype(jnp.bfloat16).astype(jnp.float32)
    wq = (weight * scale[:, None, None, None]).astype(jnp.bfloat16).astype(jnp.float32)
    bf = bias * scale + shift
    y = jax.lax.conv_general_dilated(
        xq, wq, window_strides=(stride, stride), padding=[(p, p), (p, p)],
        dimension_numbers=("NCHW", "OIHW", "NCHW"),
        precision=jax.lax.Precision.HIGHEST)
    y = y + bf[None, :, None, None]
    if activation == "relu":
        y = jnp.maximum(y, 0.0)
    return y


if __name__ == "__main__":
    key = jax.random.PRNGKey(0)
    kx1, kw1, kx2, kw2 = jax.random.split(key, 4)

    # --- Test 1: small-Cin path (kw taps folded into the contraction), BN + ReLU ------
    N, Cin, H, W = 2, 4, 16, 16
    Cout, K, stride = 8, 3, 1
    x = jax.random.normal(kx1, (N, Cin, H, W), jnp.float32)
    # Parameter init mirroring BaseConv.__init__: conv.weight ~ N(0, 0.01), conv.bias = 0,
    # bn.weight = 1, bn.bias = 0, running_mean = 0, running_var = 1 (PyTorch defaults).
    weight = 0.01 * jax.random.normal(kw1, (Cout, Cin, K, K), jnp.float32)
    bias = jnp.zeros((Cout,), jnp.float32)
    ones = jnp.ones((Cout,), jnp.float32)
    zeros = jnp.zeros((Cout,), jnp.float32)

    y = base_conv_forward(x, weight, bias, kernel=K, stride=stride,
                          use_bn=True, bn_gamma=ones, bn_beta=zeros,
                          bn_mean=zeros, bn_var=ones, activation="relu")
    y = jax.block_until_ready(y)
    y_ref = _reference(x, weight, bias, kernel=K, stride=stride, use_bn=True,
                       bn_gamma=ones, bn_beta=zeros, bn_mean=zeros, bn_var=ones,
                       bn_eps=1e-5, activation="relu")
    assert y.shape == (N, Cout, H, W), y.shape
    err1 = float(jnp.max(jnp.abs(y - y_ref)))
    assert jnp.allclose(y, y_ref, atol=3e-3, rtol=2e-2), err1

    # --- Test 2: wide-Cin path (K*K tap loop), stride 2, no BN/activation,
    #             multiple row tiles (small target_rows) -------------------------------
    N2, Cin2, H2, W2 = 2, 128, 8, 8
    Cout2, stride2 = 32, 2
    x2 = jax.random.normal(kx2, (N2, Cin2, H2, W2), jnp.float32)
    weight2 = 0.01 * jax.random.normal(kw2, (Cout2, Cin2, K, K), jnp.float32)
    bias2 = jnp.zeros((Cout2,), jnp.float32)

    y2 = base_conv_forward(x2, weight2, bias2, kernel=K, stride=stride2,
                           use_bn=False, activation=None, target_rows=64)
    y2 = jax.block_until_ready(y2)
    y2_ref = _reference(x2, weight2, bias2, kernel=K, stride=stride2, use_bn=False,
                        bn_gamma=None, bn_beta=None, bn_mean=None, bn_var=None,
                        bn_eps=1e-5, activation=None)
    Ho2 = (H2 + 2 * (K // 2) - K) // stride2 + 1
    assert y2.shape == (N2, Cout2, Ho2, Ho2), y2.shape
    err2 = float(jnp.max(jnp.abs(y2 - y2_ref)))
    assert jnp.allclose(y2, y2_ref, atol=5e-3, rtol=2e-2), err2

    print("KERNEL_OK")
</pallas_src>

<mosaic_0001>
module attributes {stable_mosaic.version = 11 : i64} {
  func.func @_conv_kernel(%arg0: i32, %arg1: i32, %arg2: i32, %arg3: i32, %arg4: memref<1x1x432x12xbf16, #tpu.memory_space<vmem>>, %arg5: memref<3x12x128xbf16, #tpu.memory_space<vmem>>, %arg6: memref<1x128xf32, #tpu.memory_space<vmem>>, %arg7: memref<1x1x384x128xbf16, #tpu.memory_space<vmem>>, %arg8: memref<384x128xf32, #tpu.memory_space<vmem>>) attributes {dimension_semantics = [#tpu.dimension_semantics<parallel>, #tpu.dimension_semantics<parallel>, #tpu.dimension_semantics<parallel>, #tpu.dimension_semantics<arbitrary>], iteration_bounds = array<i64: 2, 1, 1, 1>, scalar_prefetch = 0 : i64, scratch_operands = 1 : i64, tpu.core_type = #tpu.core_type<tc>, window_params = [{transform_indices = @transform_0, window_bounds = array<i64: 1, 1, 432, 12>}, {transform_indices = @transform_1, window_bounds = array<i64: 3, 12, 128>}, {transform_indices = @transform_2, window_bounds = array<i64: 1, 128>}, {transform_indices = @transform_3, window_bounds = array<i64: 1, 1, 384, 128>}]} {
    %c0_i32 = arith.constant 0 : i32
    %0 = arith.cmpi eq, %arg3, %c0_i32 : i32
    %1 = arith.extui %0 : i1 to i32
    %c0_i32_0 = arith.constant 0 : i32
    %2 = arith.cmpi ne, %1, %c0_i32_0 : i32
    scf.if %2 {
      %cst_25 = arith.constant 0.000000e+00 : f32
      %26 = vector.broadcast %cst_25 : f32 to vector<384x128xf32>
      %c0_26 = arith.constant 0 : index
      %c0_27 = arith.constant 0 : index
      %27 = vector.load %arg8[%c0_26, %c0_27] : memref<384x128xf32, #tpu.memory_space<vmem>>, vector<384x128xf32>
      tpu.vector_store %arg8[%c0_26, %c0_27], %26 {strides = array<i32>} : memref<384x128xf32, #tpu.memory_space<vmem>>, vector<384x128xf32>,
    } else {
    }
    %c0 = arith.constant 0 : index
    %c0_1 = arith.constant 0 : index
    %c0_2 = arith.constant 0 : index
    %c0_3 = arith.constant 0 : index
    %3 = vector.load %arg4[%c0, %c0_1, %c0_2, %c0_3] : memref<1x1x432x12xbf16, #tpu.memory_space<vmem>>, vector<1x1x384x12xbf16>
    %4 = vector.shape_cast %3 : vector<1x1x384x12xbf16> to vector<384x12xbf16>
    %c0_4 = arith.constant 0 : index
    %c0_5 = arith.constant 0 : index
    %c0_6 = arith.constant 0 : index
    %5 = vector.load %arg5[%c0_4, %c0_5, %c0_6] : memref<3x12x128xbf16, #tpu.memory_space<vmem>>, vector<1x12x128xbf16>
    %6 = vector.shape_cast %5 : vector<1x12x128xbf16> to vector<12x128xbf16>
    %cst = arith.constant dense<0.000000e+00> : vector<384x128xf32>
    %7 = tpu.matmul %4, %6, %cst {dimension_numbers = #tpu.dot_dimension_numbers<[1], [0], [0], [1], [0, 0, 1, 1], [], []>} : vector<384x12xbf16>, vector<12x128xbf16>, vector<384x128xf32> -> vector<384x128xf32>
    %c0_7 = arith.constant 0 : index
    %c0_8 = arith.constant 0 : index
    %c24 = arith.constant 24 : index
    %c0_9 = arith.constant 0 : index
    %8 = vector.load %arg4[%c0_7, %c0_8, %c24, %c0_9] : memref<1x1x432x12xbf16, #tpu.memory_space<vmem>>, vector<1x1x384x12xbf16>
    %9 = vector.shape_cast %8 : vector<1x1x384x12xbf16> to vector<384x12xbf16>
    %c1 = arith.constant 1 : index
    %c0_10 = arith.constant 0 : index
    %c0_11 = arith.constant 0 : index
    %10 = vector.load %arg5[%c1, %c0_10, %c0_11] : memref<3x12x128xbf16, #tpu.memory_space<vmem>>, vector<1x12x128xbf16>
    %11 = vector.shape_cast %10 : vector<1x12x128xbf16> to vector<12x128xbf16>
    %cst_12 = arith.constant dense<0.000000e+00> : vector<384x128xf32>
    %12 = tpu.matmul %9, %11, %cst_12 {dimension_numbers = #tpu.dot_dimension_numbers<[1], [0], [0], [1], [0, 0, 1, 1], [], []>} : vector<384x12xbf16>, vector<12x128xbf16>, vector<384x128xf32> -> vector<384x128xf32>
    %13 = arith.addf %7, %12 : vector<384x128xf32>
    %c0_13 = arith.constant 0 : index
    %c0_14 = arith.constant 0 : index
    %c48 = arith.constant 48 : index
    %c0_15 = arith.constant 0 : index
    %14 = vector.load %arg4[%c0_13, %c0_14, %c48, %c0_15] : memref<1x1x432x12xbf16, #tpu.memory_space<vmem>>, vector<1x1x384x12xbf16>
    %15 = vector.shape_cast %14 : vector<1x1x384x12xbf16> to vector<384x12xbf16>
    %c2 = arith.constant 2 : index
    %c0_16 = arith.constant 0 : index
    %c0_17 = arith.constant 0 : index
    %16 = vector.load %arg5[%c2, %c0_16, %c0_17] : memref<3x12x128xbf16, #tpu.memory_space<vmem>>, vector<1x12x128xbf16>
    %17 = vector.shape_cast %16 : vector<1x12x128xbf16> to vector<12x128xbf16>
    %cst_18 = arith.constant dense<0.000000e+00> : vector<384x128xf32>
    %18 = tpu.matmul %15, %17, %cst_18 {dimension_numbers = #tpu.dot_dimension_numbers<[1], [0], [0], [1], [0, 0, 1, 1], [], []>} : vector<384x12xbf16>, vector<12x128xbf16>, vector<384x128xf32> -> vector<384x128xf32>
    %19 = arith.addf %13, %18 : vector<384x128xf32>
    %c0_19 = arith.constant 0 : index
    %c0_20 = arith.constant 0 : index
    %20 = vector.load %arg8[%c0_19, %c0_20] : memref<384x128xf32, #tpu.memory_space<vmem>>, vector<384x128xf32>
    %21 = arith.addf %20, %19 : vector<384x128xf32>
    %c0_21 = arith.constant 0 : index
    %c0_22 = arith.constant 0 : index
    %22 = vector.load %arg8[%c0_21, %c0_22] : memref<384x128xf32, #tpu.memory_space<vmem>>, vector<384x128xf32>
    tpu.vector_store %arg8[%c0_21, %c0_22], %21 {strides = array<i32>} : memref<384x128xf32, #tpu.memory_space<vmem>>, vector<384x128xf32>,
    %c0_i32_23 = arith.constant 0 : i32
    %23 = arith.cmpi eq, %arg3, %c0_i32_23 : i32
    %24 = arith.extui %23 : i1 to i32
    %c0_i32_24 = arith.constant 0 : i32
    %25 = arith.cmpi ne, %24, %c0_i32_24 : i32
    scf.if %25 {
      %c0_25 = arith.constant 0 : index
      %c0_26 = arith.constant 0 : index
      %26 = vector.load %arg8[%c0_25, %c0_26] : memref<384x128xf32, #tpu.memory_space<vmem>>, vector<384x128xf32>
      %c0_27 = arith.constant 0 : index
      %c0_28 = arith.constant 0 : index
      %27 = vector.load %arg6[%c0_27, %c0_28] : memref<1x128xf32, #tpu.memory_space<vmem>>, vector<1x128xf32>
      %28 = vector.broadcast %27 : vector<1x128xf32> to vector<384x128xf32>
      %29 = arith.addf %26, %28 : vector<384x128xf32>
      %cst_29 = arith.constant 0.000000e+00 : f32
      %30 = vector.broadcast %cst_29 : f32 to vector<384x128xf32>
      %31 = arith.maximumf %29, %30 : vector<384x128xf32>
      %32 = arith.truncf %31 : vector<384x128xf32> to vector<384x128xbf16>
      %c0_30 = arith.constant 0 : index
      %c0_31 = arith.constant 0 : index
      %c0_32 = arith.constant 0 : index
      %c0_33 = arith.constant 0 : index
      %33 = vector.load %arg7[%c0_30, %c0_31, %c0_32, %c0_33] : memref<1x1x384x128xbf16, #tpu.memory_space<vmem>>, vector<1x1x384x128xbf16>
      %34 = vector.shape_cast %33 : vector<1x1x384x128xbf16> to vector<384x128xbf16>
      %35 = vector.shape_cast %32 : vector<384x128xbf16> to vector<1x1x384x128xbf16>
      tpu.vector_store %arg7[%c0_30, %c0_31, %c0_32, %c0_33], %35 {strides = array<i32>} : memref<1x1x384x128xbf16, #tpu.memory_space<vmem>>, vector<1x1x384x128xbf16>,
    } else {
    }
    return
  }
  func.func @transform_0(%arg0: i32, %arg1: i32, %arg2: i32, %arg3: i32) -> (i32, i32, i32, i32) {
    %c0_i32 = arith.constant 0 : i32
    %c0_i32_0 = arith.constant 0 : i32
    return %arg0, %arg1, %c0_i32, %arg3 : i32, i32, i32, i32
  }
  func.func @transform_1(%arg0: i32, %arg1: i32, %arg2: i32, %arg3: i32) -> (i32, i32, i32) {
    %c0_i32 = arith.constant 0 : i32
    %c0_i32_0 = arith.constant 0 : i32
    return %c0_i32, %arg3, %arg2 : i32, i32, i32
  }
  func.func @transform_2(%arg0: i32, %arg1: i32, %arg2: i32, %arg3: i32) -> (i32, i32) {
    %c0_i32 = arith.constant 0 : i32
    %c0_i32_0 = arith.constant 0 : i32
    return %c0_i32, %arg2 : i32, i32
  }
  func.func @transform_3(%arg0: i32, %arg1: i32, %arg2: i32, %arg3: i32) -> (i32, i32, i32, i32) {
    %c0_i32 = arith.constant 0 : i32
    %c0_i32_0 = arith.constant 0 : i32
    return %arg0, %arg1, %c0_i32, %arg2 : i32, i32, i32, i32
  }
}

</mosaic_0001>

<bundles_post_ra>
// kernel: tpu_custom_call.1
= control target key start
LH: loop header
LB: loop body
LE: loop exit
PB: predicated region body
PF: predicated region fallthrough
CT: control target
= control target key end

     0   :  { %8 = vsyncpa [#allocation4], 0  ;;  %s3802_s0 = inlined_call_operand.vmem [shape: bf16[2,1,432,12], index: 0, kind: input, shape index: {}]   ;;  %s3803_s1 = inlined_call_operand.vmem [shape: bf16[3,12,128], index: 1, kind: input, shape index: {}]   ;;  %s3804_s2 = inlined_call_operand.vmem [shape: f32[1,128], index: 2, kind: input, shape index: {}]   ;;  %s3805_s3 = inlined_call_operand.hbm [shape: bf16[2,1,384,128], index: 3, kind: output, shape index: {}]  }
   0x1   :  { %10 = vsyncpa [#allocation4 + $0x1], 0  ;;  %s3310_s12 = smov 0   ;;  %s3312_s13 = smov 0  }
   0x2   :  { %s3314_s14 = smov 0   ;;  %s3316_s15 = smov 0  }
   0x3   :  { %s3318_s16 = smov 0   ;;  %s3320_s17 = smov 0  }
   0x4 LB: > { %s2343_s18 = sadd.s32 4294967295, %s3285_s17   ;;  %s2344_s19 = sadd.s32 4294967294, %s3285_s17   ;;  %s3285_s17 = sphi %s3320_s17, %s16_s17   ;;  %s3281_s16 = sphi %s3318_s16, %s3812_s16   ;;  %s3277_s15 = sphi %s3316_s15, %s3811_s15   ;;  %s3273_s14 = sphi %s3314_s14, %s3810_s14   ;;  %s3269_s13 = sphi %s3312_s13, %s3809_s13   ;;  %s3265_s12 = sphi %s3310_s12, %s3808_s12  }
   0x5   : > { %s42_s20 = sadd.s32 1, %s3281_s16  ;;  %s137_s21 = sadd.s32 1, %s3273_s14 }
   0x6   : > { %p44_p0 = scmp.ge.s32.totalorder %s42_s20, 2  ;;  %p147_p1 = scmp.ne.s32.totalorder %s3273_s14, %s3269_s13 }
   0x7   : > { %p148_p2 = scmp.eq.s32.totalorder %s2343_s18, 1  ;;  %p153_p3 = scmp.ne.s32.totalorder %s3269_s13, %s3265_s12 }
   0x8   : > { %s3814_s20 = smov (%p44_p0, %s42_s20), 0  ;;  %p154_p5 = scmp.eq.s32.totalorder %s2344_s19, 1 }
   0x9   : > { %p3350_p4 = por %p148_p2, %p147_p1  ;;  %s130_s23 = ssub.s32 %s3281_s16, %s3814_s20 }
   0xa   : > { %p2349_p6 = scmp.ge.s32.totalorder %s3285_s17, 1  ;;  %p135_p7 = scmp.eq.s32.totalorder %s130_s23, 0 }
   0xb   : > { %p3357_p8 = por %p154_p5, %p153_p3  ;;  %p205_p9 = scmp.lt.s32.totalorder %s3285_s17, 3 }
   0xc   : > { %s3363_s25 = scalar_select %p135_p7, %s3273_s14, %s137_s21  }
   0xd   : > { %p206_p10 = pnand %p2349_p6, %p205_p9 }
   0xe   : > { %v3132_v0 = vld [vmem:[%s3803_s1 + $0x8] sm:$0x3f] (!%p206_p10)   ;;  %vm578_vm0 = vcmask (!%p206_p10), 1045504   ;;  %p247_p11 = scmp.lt.s32.totalorder (!%p206_p10), %s3277_s15, 1  ;;  %v3133_v1 = vld [vmem:[%s3803_s1] sm:$0x3f] (!%p206_p10)  }
   0xf   : > { %209 = sbr.rel (%p206_p10) target bundleno = 405 (0x195), region = 32  ;;  %3068 = vmatprep.subr.msk.bf16.mxu1 (!%p206_p10), %vm578_vm0, %v3132_v0  ;;  %v580_v2 = vsel (!%p206_p10), %vm578_vm0, %v3132_v0, 0  ;;  %v3139_v3 = vld [vmem:[%s3803_s1 + $0x10] sm:$0x3f] (!%p206_p10)   ;;  %3069 = vmatprep.subr.msk.bf16.mxu0 (!%p206_p10), %vm578_vm0, %v3133_v1  ;;  %v915_v4 = vsel (!%p206_p10), %vm578_vm0, %v3133_v1, 0  ;;  %vm505_vm1 = vcmask (!%p206_p10), 97280  }
  0x10   : > { %2821 = vmatpush3.bf16.msra.mxu1 (!%p206_p10), %v580_v2  ;;  %2871 = vmatpush3.bf16.msra.mxu0 (!%p206_p10), %v915_v4  ;;  %v1391_v16 = vsel (!%p206_p10), %vm578_vm0, %v3139_v3, 0  ;;  %s244_s18 = sand.u32 (!%p206_p10), 1, %s3269_s13   ;;  %s3074_s23 = smul.u32 (!%p206_p10), 3072, %s3277_s15 }
  0x11   : > { %3070 = vmatprep.subr.msk.bf16.mxu1 (!%p206_p10), %vm578_vm0, %v3133_v1  ;;  %3071 = vmatprep.subr.msk.bf16.mxu0 (!%p206_p10), %vm578_vm0, %v3139_v3  ;;  %s3072_s19 = smul.u32 (!%p206_p10), 192, %s244_s18  ;;  %s3287_s4 = smov (!%p206_p10), [#allocation3]  }
  0x12   : > { %s3748_s29 = scalar_lea.hbm (!%p206_p10), %s3805_s3, %s3074_s23  ;;  %s3211_s5 = sshll.u32 (!%p206_p10), %s3287_s4, 4  ;;  %s3212_s5 = int_to_ptr.vmem [resolvable:$false] %s3211_s5 }
  0x13   : > { %s3661_s21 = scalar_lea.vmem (!%p206_p10), [#allocation3], %s3072_s19 }
  0x14   : > { %s2221_s26 = sshll.u32 (!%p206_p10), %s3661_s21, 4  ;;  %s3750_s26 = int_to_ptr.vmem [resolvable:$true] %s2221_s26 }
  0x15   : > { %p3214_p1 = scmp.lt.s32.totalorder (!%p206_p10), %s3750_s26, %s3212_s5 }
  0x16   : > { %s248_s30 = scalar_select %p247_p11, %s3277_s15, 1 }
  0x17   : > { %s3756_s15 = scalar_lea.sflag [#allocation4], %s244_s18 }
  0x18   : > { %s3073_s6 = smul.u32 216, %s248_s30  ;;  %s3207_s30 = scalar_lea.vmem %s3750_s26, 3072 }
  0x19   : > { %p3208_p12 = scmp.ne.s32.totalorder %s3750_s26, %s3207_s30 }
  0x1a   : > { %s3385_s9 = scalar_lea.vmem %s3802_s0, %s3073_s6  ;;  %s3213_s6 = scalar_lea.vmem %s3212_s5, 6144 }
  0x1b   : > { %v326_v5 = vld [vmem:[%s3385_s9 + $0x8] sm:$0xf]  ;;  %v327_v6 = vld [vmem:[%s3385_s9 + $0xc] sm:$0xf]  ;;  %v328_v7 = vld [vmem:[%s3385_s9 + $0x10] sm:$0xf]  ;;  %p3209_p13 = pnand %p3208_p12, %p3350_p4  ;;  %p3215_p2 = scmp.lt.s32.totalorder %s3213_s6, %s3207_s30 }
  0x1c   : > { %v329_v8 = vld [vmem:[%s3385_s9 + $0x14] sm:$0xf]  ;;  %v330_v9 = vld [vmem:[%s3385_s9 + $0x18] sm:$0xf]  ;;  %v2353_v10 = vcombine.low %v327_v6, %v328_v7  ;;  %v2403_v11 = vcombine.low %v326_v5, %v327_v6  ;;  %v3138_v13 = vld [vmem:[%s3385_s9] sm:$0xff]  }
  0x1d   : > { %v2354_v12 = vcombine.low %v329_v8, %v330_v9  ;;  %v331_v14 = vld [vmem:[%s3385_s9 + $0x1c] sm:$0xf]  ;;  %v2404_v15 = vcombine.low %v328_v7, %v329_v8  ;;  %v332_v17 = vld [vmem:[%s3385_s9 + $0x20] sm:$0xf]  ;;  %2872 = vmatprep.mubr.msk.bf16.mxu0 %vm505_vm1, %v3138_v13  ;;  %v333_v19 = vld [vmem:[%s3385_s9 + $0x24] sm:$0xf]  ;;  %p3210_p0 = pneg %p3209_p13  ;;  %p3216_p3 = por %p3215_p2, %p3214_p1 }
  0x1e   : > { %2822 = vmatprep.mubr.msk.bf16.mxu1 %vm505_vm1, %v2353_v10  ;;  %v2355_v18 = vcombine.low %v331_v14, %v332_v17  ;;  %2873 = vmatmul.mubr.msk.bf16.vlgmr.msra.gmra.mrb[0].mxu0 %vm505_vm1, %v2403_v11  ;;  %v334_v20 = vld [vmem:[%s3385_s9 + $0x28] sm:$0xf]  ;;  %v335_v21 = vld [vmem:[%s3385_s9 + $0x2c] sm:$0xf]  ;;  %v336_v22 = vld [vmem:[%s3385_s9 + $0x30] sm:$0xf]  ;;  %v2405_v24 = vcombine.low %v330_v9, %v331_v14  ;;  %v2406_v26 = vcombine.low %v332_v17, %v333_v19 }
  0x1f   : > { %2823 = vmatmul.mubr.msk.bf16.vlgmr.msra.gmra.mrb[0].mxu1 %vm505_vm1, %v2354_v12  ;;  %2921 = vmatpush3.bf16.msra.mxu0 %v1391_v16  ;;  %v2356_v23 = vcombine.low %v333_v19, %v334_v20  ;;  %v2357_v25 = vcombine.low %v335_v21, %v336_v22  ;;  %v337_v27 = vld [vmem:[%s3385_s9 + $0x34] sm:$0xf]  ;;  %v338_v28 = vld [vmem:[%s3385_s9 + $0x38] sm:$0xf]  ;;  %v339_v29 = vld [vmem:[%s3385_s9 + $0x3c] sm:$0xf]  ;;  %v2407_v32 = vcombine.low %v334_v20, %v335_v21  ;;  %p3217_p5 = pnand %p3216_p3, %p3210_p0 }
  0x20   : > { %2971 = vmatpush3.bf16.msra.mxu1 %v915_v4  ;;  %2826 = vmatprep.mubr.msk.bf16.mxu1 %vm505_vm1, %v2355_v18  ;;  %v340_v30 = vld [vmem:[%s3385_s9 + $0x40] sm:$0xf]  ;;  %v2358_v31 = vcombine.low %v337_v27, %v338_v28  ;;  %v2408_v34 = vcombine.low %v336_v22, %v337_v27  ;;  %v341_v35 = vld [vmem:[%s3385_s9 + $0x44] sm:$0xf]  ;;  %v342_v36 = vld [vmem:[%s3385_s9 + $0x48] sm:$0xf]  ;;  %v2409_v40 = vcombine.low %v338_v28, %v339_v29 }
  0x21   : > { %2876 = vmatprep.mubr.msk.bf16.mxu0 %vm505_vm1, %v2404_v15  ;;  %v2359_v33 = vcombine.low %v339_v29, %v340_v30  ;;  %v343_v37 = vld [vmem:[%s3385_s9 + $0x4c] sm:$0xf]  ;;  %v344_v38 = vld [vmem:[%s3385_s9 + $0x50] sm:$0xf]  ;;  %v2360_v39 = vcombine.low %v341_v35, %v342_v36  ;;  %v2410_v42 = vcombine.low %v340_v30, %v341_v35  ;;  %v345_v43 = vld [vmem:[%s3385_s9 + $0x54] sm:$0xf] }
  0x22   : > { %v2361_v41 = vcombine.low %v343_v37, %v344_v38  ;;  %v346_v44 = vld [vmem:[%s3385_s9 + $0x58] sm:$0xf]  ;;  %v347_v45 = vld [vmem:[%s3385_s9 + $0x5c] sm:$0xf]  ;;  %v3430_v46 = vld [vmem:[%s3385_s9 + $0x60] sm:$0xf]  ;;  %v2411_v48 = vcombine.low %v342_v36, %v343_v37  ;;  %v2412_v50 = vcombine.low %v344_v38, %v345_v43 }
  0x23   : > { %v2362_v47 = vcombine.low %v345_v43, %v346_v44  ;;  %v2363_v49 = vcombine.low %v347_v45, %v3430_v46  ;;  %v3434_v51 = vld [vmem:[%s3385_s9 + $0x64] sm:$0xf]  ;;  %v3438_v52 = vld [vmem:[%s3385_s9 + $0x68] sm:$0xf]  ;;  %v3443_v53 = vld [vmem:[%s3385_s9 + $0x6c] sm:$0xf]  ;;  %v2413_v56 = vcombine.low %v346_v44, %v347_v45 }
  0x24   : > { %v3447_v54 = vld [vmem:[%s3385_s9 + $0x70] sm:$0xf]  ;;  %v2364_v55 = vcombine.low %v3434_v51, %v3438_v52  ;;  %v3161_v58 = vld [vmem:[%s3385_s9 + $0x18] sm:$0xff]   ;;  %v3458_v59 = vld [vmem:[%s3385_s9 + $0x74] sm:$0xf]  ;;  %v2414_v37 = vcombine.low %v3430_v46, %v3434_v51 }
  0x25   : > { %v2365_v57 = vcombine.low %v3443_v53, %v3447_v54  ;;  %v3461_v60 = vld [vmem:[%s3385_s9 + $0x78] sm:$0xf]  ;;  %v3465_v61 = vld [vmem:[%s3385_s9 + $0x7c] sm:$0xf]  ;;  %v3468_v62 = vld [vmem:[%s3385_s9 + $0x80] sm:$0xf] }
  0x26   : > { %2877 = vmatmul.mubr.msk.bf16.gmra.mrb[4].mxu0 %vm505_vm1, %v2405_v24  ;;  %v2366_v63 = vcombine.low %v3458_v59, %v3461_v60  ;;  %v3163_v0 = vld [vmem:[%s3385_s9 + $0x20] sm:$0xff]   ;;  %v2367_v1 = vcombine.low %v3465_v61, %v3468_v62  ;;  %v3165_v2 = vld [vmem:[%s3385_s9 + $0x28] sm:$0xff]   ;;  %v3490_v6 = vld [vmem:[%s3385_s9 + $0x90] sm:$0xf]  ;;  %v2417_v43 = vcombine.low %v3461_v60, %v3465_v61 }
  0x27   : > { %2827 = vmatmul.mubr.msk.bf16.gmra.mrb[4].mxu1 %vm505_vm1, %v2356_v23  ;;  %2880 = vmatprep.mubr.msk.bf16.mxu0 %vm505_vm1, %v2406_v26  ;;  %v3480_v3 = vld [vmem:[%s3385_s9 + $0x84] sm:$0xf]  ;;  %v3483_v4 = vld [vmem:[%s3385_s9 + $0x88] sm:$0xf]  ;;  %v3487_v5 = vld [vmem:[%s3385_s9 + $0x8c] sm:$0xf] }
  0x28   : > { %2830 = vmatprep.mubr.msk.bf16.mxu1 %vm505_vm1, %v2357_v25  ;;  %v2368_v7 = vcombine.low %v3480_v3, %v3483_v4  ;;  %v3167_v8 = vld [vmem:[%s3385_s9 + $0x30] sm:$0xff]   ;;  %v2369_v9 = vcombine.low %v3487_v5, %v3490_v6  ;;  %v3169_v10 = vld [vmem:[%s3385_s9 + $0x38] sm:$0xff]   ;;  %v3512_v14 = vld [vmem:[%s3385_s9 + $0xa0] sm:$0xf]  ;;  %v2418_v45 = vcombine.low %v3468_v62, %v3480_v3 }
  0x29   : > { %v3502_v11 = vld [vmem:[%s3385_s9 + $0x94] sm:$0xf]  ;;  %v3505_v12 = vld [vmem:[%s3385_s9 + $0x98] sm:$0xf]  ;;  %v3509_v13 = vld [vmem:[%s3385_s9 + $0x9c] sm:$0xf] }
  0x2a   : > { %v2370_v15 = vcombine.low %v3502_v11, %v3505_v12  ;;  %v3171_v16 = vld [vmem:[%s3385_s9 + $0x40] sm:$0xff]   ;;  %v2371_v17 = vcombine.low %v3509_v13, %v3512_v14  ;;  %v3173_v18 = vld [vmem:[%s3385_s9 + $0x48] sm:$0xff]   ;;  %v3534_v22 = vld [vmem:[%s3385_s9 + $0xb0] sm:$0xf]  ;;  %v2421_v51 = vcombine.low %v3505_v12, %v3509_v13 }
  0x2b   : > { %v3524_v19 = vld [vmem:[%s3385_s9 + $0xa4] sm:$0xf]  ;;  %v3527_v20 = vld [vmem:[%s3385_s9 + $0xa8] sm:$0xf]  ;;  %v3531_v21 = vld [vmem:[%s3385_s9 + $0xac] sm:$0xf] }
  0x2c   : > { %v2372_v23 = vcombine.low %v3524_v19, %v3527_v20  ;;  %v3175_v24 = vld [vmem:[%s3385_s9 + $0x50] sm:$0xff]   ;;  %v2373_v25 = vcombine.low %v3531_v21, %v3534_v22  ;;  %v3177_v26 = vld [vmem:[%s3385_s9 + $0x58] sm:$0xff]   ;;  %v374_v30 = vld [vmem:[%s3385_s9 + $0xc0] sm:$0xf] }
  0x2d   : > { %v369_v27 = vld [vmem:[%s3385_s9 + $0xb4] sm:$0xf]  ;;  %v3547_v28 = vld [vmem:[%s3385_s9 + $0xb8] sm:$0xf]  ;;  %v371_v29 = vld [vmem:[%s3385_s9 + $0xbc] sm:$0xf] }
  0x2e   : > { %2881 = vmatmul.mubr.msk.bf16.gmra.mrb[8].mxu0 %vm505_vm1, %v2407_v32  ;;  %v3179_v32 = vld [vmem:[%s3385_s9 + $0x60] sm:$0xff]   ;;  %v3183_v36 = vld [vmem:[%s3385_s9 + $0x70] sm:$0xff]   ;;  %v3185_v38 = vld [vmem:[%s3385_s9 + $0x78] sm:$0xff]  }
  0x2f   : > { %2831 = vmatmul.mubr.msk.bf16.gmra.mrb[8].mxu1 %vm505_vm1, %v2358_v31  ;;  %2884 = vmatprep.mubr.msk.bf16.mxu0 %vm505_vm1, %v2408_v34  ;;  %v2374_v31 = vcombine.low %v369_v27, %v3547_v28  ;;  %v3181_v34 = vld [vmem:[%s3385_s9 + $0x68] sm:$0xff]   ;;  %v3190_v44 = vld [vmem:[%s3385_s9 + $0x90] sm:$0xff]   ;;  %v3192_v46 = vld [vmem:[%s3385_s9 + $0x98] sm:$0xff]  }
  0x30   : > { %2834 = vmatprep.mubr.msk.bf16.mxu1 %vm505_vm1, %v2359_v33  ;;  %v2375_v33 = vcombine.low %v371_v29, %v374_v30  ;;  %v3182_v35 = vld [vmem:[%s3385_s9 + $0xc4] sm:$0xff]   ;;  %v3206_v60 = vld [vmem:[%s3385_s9 + $0xd0] sm:$0xff]  }
  0x36   : > { %2885 = vmatmul.mubr.msk.bf16.gmra.mrb[12].mxu0 %vm505_vm1, %v2409_v40  ;;  %v3186_v40 = vld [vmem:[%s3385_s9 + $0x80] sm:$0xff]  }
  0x37   : > { %2835 = vmatmul.mubr.msk.bf16.gmra.mrb[12].mxu1 %vm505_vm1, %v2360_v39  ;;  %2888 = vmatprep.mubr.msk.bf16.mxu0 %vm505_vm1, %v2410_v42  ;;  %v2415_v39 = vcombine.low %v3438_v52, %v3443_v53  ;;  %v3188_v42 = vld [vmem:[%s3385_s9 + $0x88] sm:$0xff]   ;;  %v3198_v52 = vld [vmem:[%s3385_s9 + $0xb0] sm:$0xff]   ;;  %v2422_v53 = vcombine.low %v3512_v14, %v3524_v19 }
  0x38   : > { %2838 = vmatprep.mubr.msk.bf16.mxu1 %vm505_vm1, %v2361_v41  ;;  %v2416_v41 = vcombine.low %v3447_v54, %v3458_v59  ;;  %v3200_v54 = vld [vmem:[%s3385_s9 + $0xb8] sm:$0xff]   ;;  %v2425_v59 = vcombine.low %v3547_v28, %v371_v29 }
  0x3e   : > { %2889 = vmatmul.mubr.msk.bf16.gmra.mrb[16].mxu0 %vm505_vm1, %v2411_v48  ;;  %v3194_v48 = vld [vmem:[%s3385_s9 + $0xa0] sm:$0xff]  }
  0x3f   : > { %2839 = vmatmul.mubr.msk.bf16.gmra.mrb[16].mxu1 %vm505_vm1, %v2362_v47  ;;  %2892 = vmatprep.mubr.msk.bf16.mxu0 %vm505_vm1, %v2412_v50  ;;  %v2419_v47 = vcombine.low %v3483_v4, %v3487_v5  ;;  %v3196_v50 = vld [vmem:[%s3385_s9 + $0xa8] sm:$0xff]  }
  0x40   : > { %2842 = vmatprep.mubr.msk.bf16.mxu1 %vm505_vm1, %v2363_v49  ;;  %v2420_v49 = vcombine.low %v3490_v6, %v3502_v11 }
  0x46   : > { %2893 = vmatmul.mubr.msk.bf16.gmra.mrb[20].mxu0 %vm505_vm1, %v2413_v56  ;;  %v3202_v56 = vld [vmem:[%s3385_s9 + $0xc0] sm:$0xff]  }
  0x47   : > { %2843 = vmatmul.mubr.msk.bf16.gmra.mrb[20].mxu1 %vm505_vm1, %v2364_v55  ;;  %2922 = vmatprep.mubr.msk.bf16.mxu0 %vm505_vm1, %v3161_v58  ;;  %v2423_v55 = vcombine.low %v3527_v20, %v3531_v21  ;;  %v3204_v58 = vld [vmem:[%s3385_s9 + $0xc8] sm:$0xff]  }
  0x48   : > { %2846 = vmatprep.mubr.msk.bf16.mxu1 %vm505_vm1, %v2365_v57  ;;  %v2424_v57 = vcombine.low %v3534_v22, %v369_v27  ;;  %v3652_v22 = vld [vmem:[%s3804_s2] ss:$0 sm:$0xff] }
  0x4e   : > { %2923 = vmatmul.mubr.msk.bf16.vlgmr.msra.gmra.mrb[0].mxu0 %vm505_vm1, %v3163_v0 }
  0x4f   : > { %2847 = vmatmul.mubr.msk.bf16.gmra.mrb[24].mxu1 %vm505_vm1, %v2366_v63  ;;  %2926 = vmatprep.mubr.msk.bf16.mxu0 %vm505_vm1, %v3165_v2 }
  0x50   : > { %2850 = vmatprep.mubr.msk.bf16.mxu1 %vm505_vm1, %v2367_v1 }
  0x56   : > { %2927 = vmatmul.mubr.msk.bf16.gmra.mrb[4].mxu0 %vm505_vm1, %v3167_v8 }
  0x57   : > { %2851 = vmatmul.mubr.msk.bf16.gmra.mrb[28].mxu1 %vm505_vm1, %v2368_v7  ;;  %2930 = vmatprep.mubr.msk.bf16.mxu0 %vm505_vm1, %v3169_v10 }
  0x58   : > { %2854 = vmatprep.mubr.msk.bf16.mxu1 %vm505_vm1, %v2369_v9 }
  0x5e   : > { %2931 = vmatmul.mubr.msk.bf16.gmra.mrb[8].mxu0 %vm505_vm1, %v3171_v16 }
  0x5f   : > { %2855 = vmatmul.mubr.msk.bf16.gmra.mrb[32].mxu1 %vm505_vm1, %v2370_v15  ;;  %2934 = vmatprep.mubr.msk.bf16.mxu0 %vm505_vm1, %v3173_v18 }
  0x60   : > { %2858 = vmatprep.mubr.msk.bf16.mxu1 %vm505_vm1, %v2371_v17 }
  0x66   : > { %2935 = vmatmul.mubr.msk.bf16.gmra.mrb[12].mxu0 %vm505_vm1, %v3175_v24 }
  0x67   : > { %2859 = vmatmul.mubr.msk.bf16.gmra.mrb[36].mxu1 %vm505_vm1, %v2372_v23  ;;  %2938 = vmatprep.mubr.msk.bf16.mxu0 %vm505_vm1, %v3177_v26 }
  0x68   : > { %2862 = vmatprep.mubr.msk.bf16.mxu1 %vm505_vm1, %v2373_v25 }
  0x6e   : > { %2939 = vmatmul.mubr.msk.bf16.gmra.mrb[16].mxu0 %vm505_vm1, %v3179_v32 }
  0x6f   : > { %2863 = vmatmul.mubr.msk.bf16.gmra.mrb[40].mxu1 %vm505_vm1, %v2374_v31  ;;  %2942 = vmatprep.mubr.msk.bf16.mxu0 %vm505_vm1, %v3181_v34 }
  0x70   : > { %2866 = vmatprep.mubr.msk.bf16.mxu1 %vm505_vm1, %v2375_v33 }
  0x76   : > { %2943 = vmatmul.mubr.msk.bf16.gmra.mrb[20].mxu0 %vm505_vm1, %v3183_v36 }
  0x77   : > { %2867 = vmatmul.mubr.msk.bf16.gmra.mrb[44].mxu1 %vm505_vm1, %v3182_v35  ;;  %2946 = vmatprep.mubr.msk.bf16.mxu0 %vm505_vm1, %v3185_v38 }
  0x78   : > { %2896 = vmatprep.mubr.msk.bf16.mxu1 %vm505_vm1, %v2414_v37 }
  0x7e   : > { %2947 = vmatmul.mubr.msk.bf16.gmra.mrb[24].mxu0 %vm505_vm1, %v3186_v40 }
  0x7f   : > { %2897 = vmatmul.mubr.msk.bf16.vlgmr.msra.gmra.mrb[24].mxu1 %vm505_vm1, %v2415_v39  ;;  %2950 = vmatprep.mubr.msk.bf16.mxu0 %vm505_vm1, %v3188_v42 }
  0x80   : > { %2900 = vmatprep.mubr.msk.bf16.mxu1 %vm505_vm1, %v2416_v41 }
  0x86   : > { %2951 = vmatmul.mubr.msk.bf16.gmra.mrb[28].mxu0 %vm505_vm1, %v3190_v44 }
  0x87   : > { %2901 = vmatmul.mubr.msk.bf16.gmra.mrb[28].mxu1 %vm505_vm1, %v2417_v43  ;;  %2954 = vmatprep.mubr.msk.bf16.mxu0 %vm505_vm1, %v3192_v46 }
  0x88   : > { %2904 = vmatprep.mubr.msk.bf16.mxu1 %vm505_vm1, %v2418_v45 }
  0x8e   : > { %2955 = vmatmul.mubr.msk.bf16.gmra.mrb[32].mxu0 %vm505_vm1, %v3194_v48 }
  0x8f   : > { %2905 = vmatmul.mubr.msk.bf16.gmra.mrb[32].mxu1 %vm505_vm1, %v2419_v47  ;;  %2958 = vmatprep.mubr.msk.bf16.mxu0 %vm505_vm1, %v3196_v50 }
  0x90   : > { %2908 = vmatprep.mubr.msk.bf16.mxu1 %vm505_vm1, %v2420_v49 }
  0x96   : > { %2959 = vmatmul.mubr.msk.bf16.gmra.mrb[36].mxu0 %vm505_vm1, %v3198_v52 }
  0x97   : > { %2909 = vmatmul.mubr.msk.bf16.gmra.mrb[36].mxu1 %vm505_vm1, %v2421_v51  ;;  %2962 = vmatprep.mubr.msk.bf16.mxu0 %vm505_vm1, %v3200_v54 }
  0x98   : > { %2912 = vmatprep.mubr.msk.bf16.mxu1 %vm505_vm1, %v2422_v53 }
  0x9e   : > { %2963 = vmatmul.mubr.msk.bf16.gmra.mrb[40].mxu0 %vm505_vm1, %v3202_v56 }
  0x9f   : > { %2913 = vmatmul.mubr.msk.bf16.gmra.mrb[40].mxu1 %vm505_vm1, %v2423_v55  ;;  %2966 = vmatprep.mubr.msk.bf16.mxu0 %vm505_vm1, %v3204_v58 }
  0xa0   : > { %2916 = vmatprep.mubr.msk.bf16.mxu1 %vm505_vm1, %v2424_v57 }
  0xa6   : > { %2967 = vmatmul.mubr.msk.bf16.gmra.mrb[44].mxu0 %vm505_vm1, %v3206_v60 }
  0xa7   : > { %2917 = vmatmul.mubr.msk.bf16.gmra.mrb[44].mxu1 %vm505_vm1, %v2425_v59 }
  0xf2   : > { %v2824_v61 = vpop.f32.mrb[0].mxu1 }
  0xf3   : > { %v616_v62 = vpop.f32.mrb[1].mxu1 }
  0xf4   : > { %v2825_v63 = vpop.f32.mrb[2].mxu1 }
  0xf5   : > { %v619_v0 = vpop.f32.mrb[3].mxu1 }
  0xfa   : > { %v2828_v1 = vpop.f32.mrb[4].mxu1 }
  0xfb   : > { %v632_v2 = vpop.f32.mrb[5].mxu1 }
  0xfc   : > { %v2829_v3 = vpop.f32.mrb[6].mxu1 }
  0xfd   : > { %v635_v4 = vpop.f32.mrb[7].mxu1 }
 0x102   : > { %v2832_v5 = vpop.f32.mrb[8].mxu1 }
 0x103   : > { %v648_v6 = vpop.f32.mrb[9].mxu1 }
 0x104   : > { %v3621_v7 = vpop.f32.mrb[10].mxu1 }
 0x105   : > { %v3623_v8 = vpop.f32.mrb[11].mxu1 }
 0x10a   : > { %v3625_v9 = vpop.f32.mrb[12].mxu1 }
 0x10b   : > { %v3627_v10 = vpop.f32.mrb[13].mxu1 }
 0x10c   : > { %v3629_v11 = vpop.f32.mrb[14].mxu1 }
 0x10d   : > { %v3631_v12 = vpop.f32.mrb[15].mxu1 }
 0x112   : > { %v3633_v13 = vpop.f32.mrb[16].mxu1 }
 0x113   : > { %v3635_v14 = vpop.f32.mrb[17].mxu1 }
 0x114   : > { %v3637_v15 = vpop.f32.mrb[18].mxu1 }
 0x115   : > { %v3639_v16 = vpop.f32.mrb[19].mxu1 }
 0x11a   : > { %v3641_v17 = vpop.f32.mrb[20].mxu1 }
 0x11b   : > { %v3643_v18 = vpop.f32.mrb[21].mxu1 }
 0x11c   : > { %v3645_v19 = vpop.f32.mrb[22].mxu1 }
 0x11d   : > { %v3647_v20 = vpop.f32.mrb[23].mxu1 }
 0x121   : > { %v2924_v21 = vpop.f32.mrb[0].mxu0 }
 0x122   : > { %v2972_v23 = vadd.f32 %v2924_v21, %v2824_v61  ;;  %v1427_v24 = vpop.f32.mrb[1].mxu0 }
 0x123   : > { %v2973_v25 = vadd.f32 %v1427_v24, %v616_v62  ;;  %v2925_v26 = vpop.f32.mrb[2].mxu0 }
 0x124   : > { %v1870_v27 = vadd.f32 %v2972_v23, %v3652_v22  ;;  %v2974_v28 = vadd.f32 %v2925_v26, %v2825_v63  ;;  %v1430_v29 = vpop.f32.mrb[3].mxu0 }
 0x125   : > { %v1868_v30 = vadd.f32 %v2973_v25, %v3652_v22  ;;  %v2975_v31 = vadd.f32 %v1430_v29, %v619_v0 }
 0x126   : > { %v1871_v32 = vadd.f32 %v2974_v28, %v3652_v22  ;;  %v1918_v34 = vmax.f32 %v1870_v27, 0.0 }
 0x127   : > { %v1869_v33 = vadd.f32 %v2975_v31, %v3652_v22  ;;  %v1916_v36 = vmax.f32 %v1868_v30, 0.0 }
 0x128   : > { %v1919_v35 = vmax.f32 %v1871_v32, 0.0 }
 0x129   : > { %v1917_v37 = vmax.f32 %v1869_v33, 0.0  ;;  %v2928_v38 = vpop.f32.mrb[4].mxu0 }
 0x12a   : > { %v2610_v39 = vpack.c.bf16 %v1919_v35, %v1918_v34  ;;  %v2976_v40 = vadd.f32 %v2928_v38, %v2828_v1  ;;  %v1443_v41 = vpop.f32.mrb[5].mxu0 }
 0x12b   : > { %v2605_v42 = vpack.c.bf16 %v1917_v37, %v1916_v36  ;;  %v2977_v43 = vadd.f32 %v1443_v41, %v632_v2  ;;  %v2929_v44 = vpop.f32.mrb[6].mxu0 }
 0x12c   : > { %2722 = vst [vmem:[%s3661_s21 + $0x8] sm:$0xff] %v2610_v39   ;;  %v1874_v45 = vadd.f32 %v2976_v40, %v3652_v22  ;;  %v2978_v46 = vadd.f32 %v2929_v44, %v2829_v3  ;;  %v1446_v47 = vpop.f32.mrb[7].mxu0 }
 0x12d   : > { %2606 = vst [vmem:[%s3661_s21] sm:$0xff] %v2605_v42   ;;  %v1872_v48 = vadd.f32 %v2977_v43, %v3652_v22  ;;  %v2979_v49 = vadd.f32 %v1446_v47, %v635_v4 }
 0x12e   : > { %v1875_v50 = vadd.f32 %v2978_v46, %v3652_v22  ;;  %v1922_v52 = vmax.f32 %v1874_v45, 0.0 }
 0x12f   : > { %v1873_v51 = vadd.f32 %v2979_v49, %v3652_v22  ;;  %v1920_v54 = vmax.f32 %v1872_v48, 0.0 }
 0x130   : > { %v1923_v53 = vmax.f32 %v1875_v50, 0.0 }
 0x131   : > { %v1921_v55 = vmax.f32 %v1873_v51, 0.0  ;;  %v2932_v56 = vpop.f32.mrb[8].mxu0 }
 0x132   : > { %v2620_v57 = vpack.c.bf16 %v1923_v53, %v1922_v52  ;;  %v2980_v58 = vadd.f32 %v2932_v56, %v2832_v5  ;;  %v1459_v59 = vpop.f32.mrb[9].mxu0 }
 0x133   : > { %v2615_v60 = vpack.c.bf16 %v1921_v55, %v1920_v54  ;;  %v2981_v61 = vadd.f32 %v1459_v59, %v648_v6  ;;  %v2933_v62 = vpop.f32.mrb[10].mxu0 }
 0x134   : > { %2724 = vst [vmem:[%s3661_s21 + $0x18] sm:$0xff] %v2620_v57   ;;  %v1878_v63 = vadd.f32 %v2980_v58, %v3652_v22  ;;  %v2982_v0 = vadd.f32 %v2933_v62, %v3621_v7  ;;  %v1462_v1 = vpop.f32.mrb[11].mxu0 }
 0x135   : > { %2723 = vst [vmem:[%s3661_s21 + $0x10] sm:$0xff] %v2615_v60   ;;  %v1876_v2 = vadd.f32 %v2981_v61, %v3652_v22  ;;  %v2983_v3 = vadd.f32 %v1462_v1, %v3623_v8 }
 0x136   : > { %v1879_v4 = vadd.f32 %v2982_v0, %v3652_v22  ;;  %v1926_v21 = vmax.f32 %v1878_v63, 0.0 }
 0x137   : > { %v1877_v5 = vadd.f32 %v2983_v3, %v3652_v22  ;;  %v1924_v23 = vmax.f32 %v1876_v2, 0.0 }
 0x138   : > { %v1927_v6 = vmax.f32 %v1879_v4, 0.0 }
 0x139   : > { %v1925_v24 = vmax.f32 %v1877_v5, 0.0  ;;  %v2936_v25 = vpop.f32.mrb[12].mxu0 }
 0x13a   : > { %v2630_v26 = vpack.c.bf16 %v1927_v6, %v1926_v21  ;;  %v2984_v7 = vadd.f32 %v2936_v25, %v3625_v9  ;;  %v1475_v27 = vpop.f32.mrb[13].mxu0 }
 0x13b   : > { %v2625_v28 = vpack.c.bf16 %v1925_v24, %v1924_v23  ;;  %v2985_v29 = vadd.f32 %v1475_v27, %v3627_v10  ;;  %v2937_v30 = vpop.f32.mrb[14].mxu0 }
 0x13c   : > { %2726 = vst [vmem:[%s3661_s21 + $0x28] sm:$0xff] %v2630_v26   ;;  %v1882_v8 = vadd.f32 %v2984_v7, %v3652_v22  ;;  %v2986_v31 = vadd.f32 %v2937_v30, %v3629_v11  ;;  %v1478_v32 = vpop.f32.mrb[15].mxu0 }
 0x13d   : > { %2725 = vst [vmem:[%s3661_s21 + $0x20] sm:$0xff] %v2625_v28   ;;  %v1880_v33 = vadd.f32 %v2985_v29, %v3652_v22  ;;  %v2987_v34 = vadd.f32 %v1478_v32, %v3631_v12 }
 0x13e   : > { %v1883_v35 = vadd.f32 %v2986_v31, %v3652_v22  ;;  %v1930_v36 = vmax.f32 %v1882_v8, 0.0 }
 0x13f   : > { %v1881_v9 = vadd.f32 %v2987_v34, %v3652_v22  ;;  %v1928_v37 = vmax.f32 %v1880_v33, 0.0 }
 0x140   : > { %v1931_v10 = vmax.f32 %v1883_v35, 0.0 }
 0x141   : > { %v1929_v38 = vmax.f32 %v1881_v9, 0.0  ;;  %v2940_v39 = vpop.f32.mrb[16].mxu0 }
 0x142   : > { %v2640_v40 = vpack.c.bf16 %v1931_v10, %v1930_v36  ;;  %v2988_v11 = vadd.f32 %v2940_v39, %v3633_v13  ;;  %v1491_v41 = vpop.f32.mrb[17].mxu0 }
 0x143   : > { %v2635_v42 = vpack.c.bf16 %v1929_v38, %v1928_v37  ;;  %v2989_v43 = vadd.f32 %v1491_v41, %v3635_v14  ;;  %v2941_v44 = vpop.f32.mrb[18].mxu0 }
 0x144   : > { %2728 = vst [vmem:[%s3661_s21 + $0x38] sm:$0xff] %v2640_v40   ;;  %v1886_v12 = vadd.f32 %v2988_v11, %v3652_v22  ;;  %v2990_v45 = vadd.f32 %v2941_v44, %v3637_v15  ;;  %v1494_v46 = vpop.f32.mrb[19].mxu0 }
 0x145   : > { %2727 = vst [vmem:[%s3661_s21 + $0x30] sm:$0xff] %v2635_v42   ;;  %v1884_v47 = vadd.f32 %v2989_v43, %v3652_v22  ;;  %v2991_v48 = vadd.f32 %v1494_v46, %v3639_v16 }
 0x146   : > { %v1887_v49 = vadd.f32 %v2990_v45, %v3652_v22  ;;  %v1934_v50 = vmax.f32 %v1886_v12, 0.0 }
 0x147   : > { %v1885_v13 = vadd.f32 %v2991_v48, %v3652_v22  ;;  %v1932_v51 = vmax.f32 %v1884_v47, 0.0 }
 0x148   : > { %v1935_v14 = vmax.f32 %v1887_v49, 0.0 }
 0x149   : > { %v1933_v52 = vmax.f32 %v1885_v13, 0.0  ;;  %v2944_v53 = vpop.f32.mrb[20].mxu0 }
 0x14a   : > { %v2650_v54 = vpack.c.bf16 %v1935_v14, %v1934_v50  ;;  %v2992_v15 = vadd.f32 %v2944_v53, %v3641_v17  ;;  %v1507_v55 = vpop.f32.mrb[21].mxu0 }
 0x14b   : > { %v2645_v56 = vpack.c.bf16 %v1933_v52, %v1932_v51  ;;  %v2993_v57 = vadd.f32 %v1507_v55, %v3643_v18  ;;  %v2945_v58 = vpop.f32.mrb[22].mxu0 }
 0x14c   : > { %2730 = vst [vmem:[%s3661_s21 + $0x48] sm:$0xff] %v2650_v54   ;;  %v1890_v16 = vadd.f32 %v2992_v15, %v3652_v22  ;;  %v2994_v59 = vadd.f32 %v2945_v58, %v3645_v19  ;;  %v1510_v60 = vpop.f32.mrb[23].mxu0 }
 0x14d   : > { %2729 = vst [vmem:[%s3661_s21 + $0x40] sm:$0xff] %v2645_v56   ;;  %v1888_v61 = vadd.f32 %v2993_v57, %v3652_v22  ;;  %v2995_v62 = vadd.f32 %v1510_v60, %v3647_v20 }
 0x14e   : > { %v1891_v63 = vadd.f32 %v2994_v59, %v3652_v22  ;;  %v1938_v0 = vmax.f32 %v1890_v16, 0.0 }
 0x14f   : > { %v1889_v17 = vadd.f32 %v2995_v62, %v3652_v22  ;;  %v1936_v2 = vmax.f32 %v1888_v61, 0.0 }
 0x150   : > { %v1939_v1 = vmax.f32 %v1891_v63, 0.0 }
 0x151   : > { %v1937_v3 = vmax.f32 %v1889_v17, 0.0  ;;  %v2948_v4 = vpop.f32.mrb[24].mxu0 }
 0x152   : > { %v2898_v18 = vpop.f32.mrb[24].mxu1  ;;  %v2660_v19 = vpack.c.bf16 %v1939_v1, %v1938_v0  ;;  %v1523_v6 = vpop.f32.mrb[25].mxu0 }
 0x153   : > { %v1047_v5 = vpop.f32.mrb[25].mxu1  ;;  %v2996_v21 = vadd.f32 %v2948_v4, %v2898_v18  ;;  %v2655_v24 = vpack.c.bf16 %v1937_v3, %v1936_v2  ;;  %v2949_v20 = vpop.f32.mrb[26].mxu0 }
 0x154   : > { %v2899_v23 = vpop.f32.mrb[26].mxu1  ;;  %v2997_v25 = vadd.f32 %v1523_v6, %v1047_v5  ;;  %2732 = vst [vmem:[%s3661_s21 + $0x58] sm:$0xff] %v2660_v19   ;;  %v1526_v28 = vpop.f32.mrb[27].mxu0 }
 0x155   : > { %v1050_v26 = vpop.f32.mrb[27].mxu1  ;;  %v1894_v7 = vadd.f32 %v2996_v21, %v3652_v22  ;;  %v2998_v27 = vadd.f32 %v2949_v20, %v2899_v23  ;;  %2731 = vst [vmem:[%s3661_s21 + $0x50] sm:$0xff] %v2655_v24  }
 0x156   : > { %v1892_v29 = vadd.f32 %v2997_v25, %v3652_v22  ;;  %v2999_v30 = vadd.f32 %v1526_v28, %v1050_v26 }
 0x157   : > { %v1895_v8 = vadd.f32 %v2998_v27, %v3652_v22  ;;  %v1942_v32 = vmax.f32 %v1894_v7, 0.0 }
 0x158   : > { %v1893_v31 = vadd.f32 %v2999_v30, %v3652_v22  ;;  %v1940_v35 = vmax.f32 %v1892_v29, 0.0 }
 0x159   : > { %v1943_v33 = vmax.f32 %v1895_v8, 0.0  ;;  %v2952_v36 = vpop.f32.mrb[28].mxu0 }
 0x15a   : > { %v2902_v34 = vpop.f32.mrb[28].mxu1  ;;  %v1941_v9 = vmax.f32 %v1893_v31, 0.0  ;;  %v1539_v39 = vpop.f32.mrb[29].mxu0 }
 0x15b   : > { %v1063_v10 = vpop.f32.mrb[29].mxu1  ;;  %v2670_v37 = vpack.c.bf16 %v1943_v33, %v1942_v32  ;;  %v3000_v38 = vadd.f32 %v2952_v36, %v2902_v34  ;;  %v2953_v42 = vpop.f32.mrb[30].mxu0 }
 0x15c   : > { %v2903_v40 = vpop.f32.mrb[30].mxu1  ;;  %v2665_v11 = vpack.c.bf16 %v1941_v9, %v1940_v35  ;;  %v3001_v41 = vadd.f32 %v1539_v39, %v1063_v10  ;;  %v1542_v45 = vpop.f32.mrb[31].mxu0 }
 0x15d   : > { %v1066_v43 = vpop.f32.mrb[31].mxu1  ;;  %2734 = vst [vmem:[%s3661_s21 + $0x68] sm:$0xff] %v2670_v37   ;;  %v1898_v44 = vadd.f32 %v3000_v38, %v3652_v22  ;;  %v3002_v12 = vadd.f32 %v2953_v42, %v2903_v40 }
 0x15e   : > { %2733 = vst [vmem:[%s3661_s21 + $0x60] sm:$0xff] %v2665_v11   ;;  %v1896_v46 = vadd.f32 %v3001_v41, %v3652_v22  ;;  %v3003_v47 = vadd.f32 %v1542_v45, %v1066_v43 }
 0x15f   : > { %v1899_v48 = vadd.f32 %v3002_v12, %v3652_v22  ;;  %v1946_v13 = vmax.f32 %v1898_v44, 0.0 }
 0x160   : > { %v1897_v49 = vadd.f32 %v3003_v47, %v3652_v22  ;;  %v1944_v51 = vmax.f32 %v1896_v46, 0.0 }
 0x161   : > { %v1947_v50 = vmax.f32 %v1899_v48, 0.0  ;;  %v2956_v53 = vpop.f32.mrb[32].mxu0 }
 0x162   : > { %v2906_v14 = vpop.f32.mrb[32].mxu1  ;;  %v1945_v52 = vmax.f32 %v1897_v49, 0.0  ;;  %v1555_v56 = vpop.f32.mrb[33].mxu0 }
 0x163   : > { %v1079_v54 = vpop.f32.mrb[33].mxu1  ;;  %v2680_v15 = vpack.c.bf16 %v1947_v50, %v1946_v13  ;;  %v3004_v55 = vadd.f32 %v2956_v53, %v2906_v14  ;;  %v2957_v59 = vpop.f32.mrb[34].mxu0 }
 0x164   : > { %v2907_v57 = vpop.f32.mrb[34].mxu1  ;;  %v2675_v58 = vpack.c.bf16 %v1945_v52, %v1944_v51  ;;  %v3005_v16 = vadd.f32 %v1555_v56, %v1079_v54  ;;  %v1558_v63 = vpop.f32.mrb[35].mxu0 }
 0x165   : > { %v1082_v60 = vpop.f32.mrb[35].mxu1  ;;  %2736 = vst [vmem:[%s3661_s21 + $0x78] sm:$0xff] %v2680_v15   ;;  %v1902_v61 = vadd.f32 %v3004_v55, %v3652_v22  ;;  %v3006_v62 = vadd.f32 %v2957_v59, %v2907_v57 }
 0x166   : > { %2735 = vst [vmem:[%s3661_s21 + $0x70] sm:$0xff] %v2675_v58   ;;  %v1900_v17 = vadd.f32 %v3005_v16, %v3652_v22  ;;  %v3007_v0 = vadd.f32 %v1558_v63, %v1082_v60 }
 0x167   : > { %v1903_v1 = vadd.f32 %v3006_v62, %v3652_v22  ;;  %v1950_v2 = vmax.f32 %v1902_v61, 0.0 }
 0x168   : > { %v1901_v18 = vadd.f32 %v3007_v0, %v3652_v22  ;;  %v1948_v5 = vmax.f32 %v1900_v17, 0.0 }
 0x169   : > { %v1951_v3 = vmax.f32 %v1903_v1, 0.0  ;;  %v2960_v21 = vpop.f32.mrb[36].mxu0 }
 0x16a   : > { %v2910_v4 = vpop.f32.mrb[36].mxu1  ;;  %v1949_v19 = vmax.f32 %v1901_v18, 0.0  ;;  %v1571_v25 = vpop.f32.mrb[37].mxu0 }
 0x16b   : > { %v1095_v6 = vpop.f32.mrb[37].mxu1  ;;  %v2690_v23 = vpack.c.bf16 %v1951_v3, %v1950_v2  ;;  %v3008_v24 = vadd.f32 %v2960_v21, %v2910_v4  ;;  %v2961_v27 = vpop.f32.mrb[38].mxu0 }
 0x16c   : > { %v2911_v20 = vpop.f32.mrb[38].mxu1  ;;  %v2685_v26 = vpack.c.bf16 %v1949_v19, %v1948_v5  ;;  %v3009_v7 = vadd.f32 %v1571_v25, %v1095_v6  ;;  %v1574_v8 = vpop.f32.mrb[39].mxu0 }
 0x16d   : > { %v1098_v28 = vpop.f32.mrb[39].mxu1  ;;  %2738 = vst [vmem:[%s3661_s21 + $0x88] sm:$0xff] %v2690_v23   ;;  %v1906_v29 = vadd.f32 %v3008_v24, %v3652_v22  ;;  %v3010_v30 = vadd.f32 %v2961_v27, %v2911_v20 }
 0x16e   : > { %2737 = vst [vmem:[%s3661_s21 + $0x80] sm:$0xff] %v2685_v26   ;;  %v1904_v31 = vadd.f32 %v3009_v7, %v3652_v22  ;;  %v3011_v32 = vadd.f32 %v1574_v8, %v1098_v28 }
 0x16f   : > { %v1907_v33 = vadd.f32 %v3010_v30, %v3652_v22  ;;  %v1954_v35 = vmax.f32 %v1906_v29, 0.0 }
 0x170   : > { %v1905_v34 = vadd.f32 %v3011_v32, %v3652_v22  ;;  %v1952_v10 = vmax.f32 %v1904_v31, 0.0 }
 0x171   : > { %v1955_v9 = vmax.f32 %v1907_v33, 0.0  ;;  %v2964_v38 = vpop.f32.mrb[40].mxu0 }
 0x172   : > { %v2914_v36 = vpop.f32.mrb[40].mxu1  ;;  %v1953_v37 = vmax.f32 %v1905_v34, 0.0  ;;  %v1587_v41 = vpop.f32.mrb[41].mxu0 }
 0x173   : > { %v1111_v39 = vpop.f32.mrb[41].mxu1  ;;  %v2700_v40 = vpack.c.bf16 %v1955_v9, %v1954_v35  ;;  %v3012_v11 = vadd.f32 %v2964_v38, %v2914_v36  ;;  %v2965_v12 = vpop.f32.mrb[42].mxu0 }
 0x174   : > { %v2915_v42 = vpop.f32.mrb[42].mxu1  ;;  %v2695_v43 = vpack.c.bf16 %v1953_v37, %v1952_v10  ;;  %v3013_v44 = vadd.f32 %v1587_v41, %v1111_v39  ;;  %v1590_v48 = vpop.f32.mrb[43].mxu0 }
 0x175   : > { %v1114_v45 = vpop.f32.mrb[43].mxu1  ;;  %2740 = vst [vmem:[%s3661_s21 + $0x98] sm:$0xff] %v2700_v40   ;;  %v1910_v46 = vadd.f32 %v3012_v11, %v3652_v22  ;;  %v3014_v47 = vadd.f32 %v2965_v12, %v2915_v42 }
 0x176   : > { %2739 = vst [vmem:[%s3661_s21 + $0x90] sm:$0xff] %v2695_v43   ;;  %v1908_v49 = vadd.f32 %v3013_v44, %v3652_v22  ;;  %v3015_v13 = vadd.f32 %v1590_v48, %v1114_v45 }
 0x177   : > { %v1911_v50 = vadd.f32 %v3014_v47, %v3652_v22  ;;  %v1958_v51 = vmax.f32 %v1910_v46, 0.0 }
 0x178   : > { %v1909_v14 = vadd.f32 %v3015_v13, %v3652_v22  ;;  %v1956_v54 = vmax.f32 %v1908_v49, 0.0 }
 0x179   : > { %v1959_v52 = vmax.f32 %v1911_v50, 0.0  ;;  %v2968_v55 = vpop.f32.mrb[44].mxu0 }
 0x17a   : > { %v2918_v53 = vpop.f32.mrb[44].mxu1  ;;  %v1957_v15 = vmax.f32 %v1909_v14, 0.0  ;;  %v1603_v16 = vpop.f32.mrb[45].mxu0 }
 0x17b   : > { %v1127_v56 = vpop.f32.mrb[45].mxu1  ;;  %v2710_v57 = vpack.c.bf16 %v1959_v52, %v1958_v51  ;;  %v3016_v58 = vadd.f32 %v2968_v55, %v2918_v53  ;;  %v2969_v62 = vpop.f32.mrb[46].mxu0 }
 0x17c   : > { %v2919_v59 = vpop.f32.mrb[46].mxu1  ;;  %v2705_v60 = vpack.c.bf16 %v1957_v15, %v1956_v54  ;;  %v3017_v61 = vadd.f32 %v1603_v16, %v1127_v56  ;;  %v1606_v1 = vpop.f32.mrb[47].mxu0 }
 0x17d   : > { %v1130_v63 = vpop.f32.mrb[47].mxu1  ;;  %2742 = vst [vmem:[%s3661_s21 + $0xa8] sm:$0xff] %v2710_v57   ;;  %v1914_v17 = vadd.f32 %v3016_v58, %v3652_v22  ;;  %v3018_v0 = vadd.f32 %v2969_v62, %v2919_v59 }
 0x17e   : > { %2741 = vst [vmem:[%s3661_s21 + $0xa0] sm:$0xff] %v2705_v60   ;;  %v1912_v18 = vadd.f32 %v3017_v61, %v3652_v22  ;;  %v3019_v2 = vadd.f32 %v1606_v1, %v1130_v63 }
 0x17f   : > { %v1915_v3 = vadd.f32 %v3018_v0, %v3652_v22  ;;  %v1962_v5 = vmax.f32 %v1914_v17, 0.0 }
 0x180   : > { %v1913_v4 = vadd.f32 %v3019_v2, %v3652_v22  ;;  %v1960_v21 = vmax.f32 %v1912_v18, 0.0 }
 0x181   : > { %v1963_v19 = vmax.f32 %v1915_v3, 0.0 }
 0x182   : > { %v1961_v6 = vmax.f32 %v1913_v4, 0.0 }
 0x183   : > { %v2720_v23 = vpack.c.bf16 %v1963_v19, %v1962_v5 }
 0x184   : > { %v2715_v24 = vpack.c.bf16 %v1961_v6, %v1960_v21 }
 0x185   : > { %2744 = vst [vmem:[%s3661_s21 + $0xb8] sm:$0xff] %v2720_v23  }
 0x186   : > { %2743 = vst [vmem:[%s3661_s21 + $0xb0] sm:$0xff] %v2715_v24  }
 0x187   : > { %3220 = shalt.err (!%p3217_p5)
}
 0x188   : > { %s3221_s7 = scalar_lea.hbm %s3748_s29, 3072  ;;  %s3225_s10 = scalar_lea.hbm %s3805_s3, 6144 }
 0x189   : > { %p3222_p6 = scmp.ne.s32.totalorder %s3748_s29, %s3221_s7  ;;  %p3226_p10 = scmp.lt.u32.totalorder %s3748_s29, %s3805_s3 }
 0x18a   : > { %p3227_p11 = scmp.lt.u32.totalorder %s3225_s10, %s3221_s7  ;;  %p3229_p13 = scmp.lt.u32.totalorder %s3221_s7, %s3748_s29 }
 0x18b   : > { %p3223_p7 = pnand %p3222_p6, %p3350_p4 }
 0x18c   : > { %p3228_p12 = por %p3227_p11, %p3226_p10 }
 0x18d   : > { %p3224_p9 = pneg %p3223_p7 }
 0x18e   : > { %p3230_p0 = por %p3229_p13, %p3228_p12 }
 0x190   : > { %p3231_p1 = pnand %p3230_p0, %p3224_p9 }
 0x192   : > { %3234 = shalt.err (!%p3231_p1)
}
 0x193   : > { %s3288_s19 = smov 64   ;;  %s3289_s21 = smov 4  }
 0x194   : > { %3075 = dma.vmem_to_hbm [thread:$0]  (%p3350_p4), %s3750_s26, 3072, %s3748_s29, %s3756_s15, %s3288_s19, %s3288_s19, %s3289_s21  }
 0x195 PF: > { %p3081_p2 = scmp.ge.s32.totalorder %s3285_s17, 2  ;;  %s2236_s23 = sand.u32 1, %s3265_s12  }
 0x196   : > { %s2237_s27 = scalar_lea.sflag [#allocation4], %s2236_s23 }
 0x197   : > { %p3078_p3 = pnand %p3081_p2, %p3357_p8 }
 0x199   : > { %3260 = dma.done.wait (!%p3078_p3), %s2237_s27, 3072  }
 0x19a   : > { %3262 = vsyncadd (!%p3078_p3), %s2237_s27, 4294964224  ;;  %s16_s17 = sadd.s32 1, %s3285_s17   ;;  %s3808_s12 = smov %s3269_s13 }
 0x19b   : > { %p13_p5 = scmp.ge.s32.totalorder %s16_s17, 4   ;;  %s3809_s13 = smov %s3273_s14 }
 0x19c   : > { %s3810_s14 = smov %s3363_s25  ;;  %s3811_s15 = smov %s3281_s16 }
 0x19d   : > { %s3812_s16 = smov %s3814_s20  ;;  %15 = sbr.rel (!%p13_p5) target bundleno = 4 (0x4), region = 83 }
 0x1a4   :  { %2242 = vsyncpa [#allocation4], 1 }
 0x1a5   :  { %2244 = vsyncpa [#allocation4 + $0x1], 1 }

</bundles_post_ra>
